<compile_context>
chip_gen: v7x
topology: tpu7x:2x2x1
jax: 0.10.0
libtpu: 0.0.40
codegen_flags: <defaults>
</compile_context>

<pallas_src>
import jax
import jax.numpy as jnp
from jax.experimental import pallas as pl
from jax.experimental.pallas import tpu as pltpu


def _round_up(x: int, m: int) -> int:
    return (x + m - 1) // m * m


def _choose_feature_tile(d: int) -> int:
    """Feature-axis tile: whole D for modest widths, otherwise the largest
    lane-aligned tile that divides D exactly (never ragged on the reduction
    axis — garbage in a padded reduction chunk would corrupt the sum)."""
    if d <= 2048:
        return d
    for td in (2048, 1024, 512, 256, 128):
        if d % td == 0:
            return td
    return d  # odd large D: single block (correct, just less pipelined)


def _choose_batch_tile(b_pad: int, td: int, in_itemsize: int, out_itemsize: int,
                       *, budget_bytes: int = 16 << 20, cap: int = 8192) -> int:
    """Largest multiple-of-128 batch tile that divides b_pad and keeps the
    double-buffered pipeline inside the VMEM budget on all TPU generations."""
    lane_td = _round_up(td, 128)                       # lane padding in VMEM
    per_row = (2 * 2 * lane_td * in_itemsize           # c1, c2: 2 bufs each
               + 2 * 128 * out_itemsize                # (TB,1) out block, lane-padded, 2 bufs
               + 128 * 4)                              # (TB,1) f32 accumulator
    tb = min(cap, max(128, budget_bytes // per_row), b_pad)
    tb = max(128, (tb // 128) * 128)
    while b_pad % tb:                                  # b_pad is a multiple of 128
        tb -= 128
    return tb


def direct_ranker_kernel(c1_ref, c2_ref, w_ref, o_ref, acc_ref):
    k = pl.program_id(1)

    @pl.when(k == 0)
    def _init():
        acc_ref[...] = jnp.zeros_like(acc_ref)

    # float32 accumulation regardless of input dtype (bf16-safe).
    diff = c1_ref[...].astype(jnp.float32) - c2_ref[...].astype(jnp.float32)  # [TB, TD]
    w = w_ref[...].astype(jnp.float32)                                        # [1, TD]
    # VPU multiply + XLU lane reduce; MXU intentionally not used (out_dim == 1).
    acc_ref[...] += jnp.sum(diff * w, axis=-1, keepdims=True)                 # [TB, 1]

    @pl.when(k == pl.num_programs(1) - 1)
    def _finalize():
        o_ref[...] = jnp.tanh(acc_ref[...] * 0.5).astype(o_ref.dtype)


def direct_ranker(candidate_1: jax.Array, candidate_2: jax.Array,
                  weight: jax.Array) -> jax.Array:
    """candidate_*: [B, in_dim], weight: [1, in_dim] (or [in_dim]) -> [B, 1]."""
    candidate_1 = jnp.asarray(candidate_1)
    candidate_2 = jnp.asarray(candidate_2)
    weight = jnp.asarray(weight).reshape(1, -1)

    B, D = candidate_1.shape
    assert candidate_2.shape == (B, D)
    assert weight.shape == (1, D)

    out_dtype = candidate_1.dtype
    B_pad = _round_up(max(B, 1), 128)
    TD = _choose_feature_tile(D)
    TB = _choose_batch_tile(B_pad, TD,
                            jnp.dtype(candidate_1.dtype).itemsize,
                            jnp.dtype(out_dtype).itemsize)

    if B_pad != B:
        pad = ((0, B_pad - B), (0, 0))
        c1 = jnp.pad(candidate_1, pad)
        c2 = jnp.pad(candidate_2, pad)
    else:
        c1, c2 = candidate_1, candidate_2

    grid = (B_pad // TB, D // TD)

    out = pl.pallas_call(
        direct_ranker_kernel,
        out_shape=jax.ShapeDtypeStruct((B_pad, 1), out_dtype),
        grid_spec=pltpu.PrefetchScalarGridSpec(
            num_scalar_prefetch=0,
            grid=grid,
            in_specs=[
                pl.BlockSpec((TB, TD), lambda i, k: (i, k)),
                pl.BlockSpec((TB, TD), lambda i, k: (i, k)),
                pl.BlockSpec((1, TD), lambda i, k: (0, k)),   # weight stays resident
            ],
            out_specs=pl.BlockSpec((TB, 1), lambda i, k: (i, 0)),
            scratch_shapes=[pltpu.VMEM((TB, 1), jnp.float32)],
        ),
        compiler_params=pltpu.CompilerParams(
            dimension_semantics=("parallel", "arbitrary"),
            vmem_limit_bytes=32 * 1024 * 1024,
        ),
    )(c1, c2, weight)

    return out[:B]


def _ref_direct_ranker(c1, c2, w):
    d = c1.astype(jnp.float32) - c2.astype(jnp.float32)
    s = jnp.sum(d * w.astype(jnp.float32), axis=-1, keepdims=True)
    return jnp.tanh(s * 0.5).astype(c1.dtype)


if __name__ == "__main__":
    key = jax.random.PRNGKey(0)

    cases = [
        (8, 32),      # module-scale example (padded to one 128-row tile)
        (300, 48),    # ragged batch -> host-side pad to 384, sliced back
        (256, 2560),  # wide features -> feature-axis split (TD=512, 5 k-steps)
    ]
    for case_idx, (B, in_dim) in enumerate(cases):
        k1, k2, kw = jax.random.split(jax.random.fold_in(key, case_idx), 3)
        candidate_1 = jax.random.normal(k1, (B, in_dim), dtype=jnp.float32)
        candidate_2 = jax.random.normal(k2, (B, in_dim), dtype=jnp.float32)
        # Deterministic Linear weight init (uniform in +-1/sqrt(in_dim), like PyTorch).
        bound = 1.0 / (in_dim ** 0.5)
        weight = jax.random.uniform(kw, (1, in_dim), dtype=jnp.float32,
                                    minval=-bound, maxval=bound)

        out = jax.block_until_ready(direct_ranker(candidate_1, candidate_2, weight))
        ref = _ref_direct_ranker(candidate_1, candidate_2, weight)

        assert out.shape == (B, 1), (out.shape, B)
        assert jnp.allclose(out, ref, atol=1e-5, rtol=1e-5), (B, in_dim)

    print("KERNEL_OK")
</pallas_src>

<mosaic_0001>
module attributes {stable_mosaic.version = 11 : i64} {
  func.func @direct_ranker_kernel(%arg0: i32, %arg1: i32, %arg2: memref<128x32xf32, #tpu.memory_space<vmem>>, %arg3: memref<128x32xf32, #tpu.memory_space<vmem>>, %arg4: memref<1x32xf32, #tpu.memory_space<vmem>>, %arg5: memref<128x1xf32, #tpu.memory_space<vmem>>, %arg6: memref<128x1xf32, #tpu.memory_space<vmem>>) attributes {dimension_semantics = [#tpu.dimension_semantics<parallel>, #tpu.dimension_semantics<arbitrary>], iteration_bounds = array<i64: 1, 1>, scalar_prefetch = 0 : i64, scratch_operands = 1 : i64, tpu.core_type = #tpu.core_type<tc>, window_params = [{transform_indices = @transform_0, window_bounds = array<i64: 128, 32>}, {transform_indices = @transform_1, window_bounds = array<i64: 128, 32>}, {transform_indices = @transform_2, window_bounds = array<i64: 1, 32>}, {transform_indices = @transform_3, window_bounds = array<i64: 128, 1>}]} {
    %c0_i32 = arith.constant 0 : i32
    %0 = arith.cmpi eq, %arg1, %c0_i32 : i32
    %1 = arith.extui %0 : i1 to i32
    %c0_i32_0 = arith.constant 0 : i32
    %2 = arith.cmpi ne, %1, %c0_i32_0 : i32
    scf.if %2 {
      %cst_12 = arith.constant 0.000000e+00 : f32
      %17 = vector.broadcast %cst_12 : f32 to vector<128x1xf32>
      %c0_13 = arith.constant 0 : index
      %c0_14 = arith.constant 0 : index
      %18 = vector.load %arg6[%c0_13, %c0_14] : memref<128x1xf32, #tpu.memory_space<vmem>>, vector<128x1xf32>
      tpu.vector_store %arg6[%c0_13, %c0_14], %17 {strides = array<i32>} : memref<128x1xf32, #tpu.memory_space<vmem>>, vector<128x1xf32>,
    } else {
    }
    %c0 = arith.constant 0 : index
    %c0_1 = arith.constant 0 : index
    %3 = vector.load %arg2[%c0, %c0_1] : memref<128x32xf32, #tpu.memory_space<vmem>>, vector<128x32xf32>
    %c0_2 = arith.constant 0 : index
    %c0_3 = arith.constant 0 : index
    %4 = vector.load %arg3[%c0_2, %c0_3] : memref<128x32xf32, #tpu.memory_space<vmem>>, vector<128x32xf32>
    %5 = arith.subf %3, %4 : vector<128x32xf32>
    %c0_4 = arith.constant 0 : index
    %c0_5 = arith.constant 0 : index
    %6 = vector.load %arg4[%c0_4, %c0_5] : memref<1x32xf32, #tpu.memory_space<vmem>>, vector<1x32xf32>
    %c0_6 = arith.constant 0 : index
    %c0_7 = arith.constant 0 : index
    %7 = vector.load %arg6[%c0_6, %c0_7] : memref<128x1xf32, #tpu.memory_space<vmem>>, vector<128x1xf32>
    %8 = vector.broadcast %6 : vector<1x32xf32> to vector<128x32xf32>
    %9 = arith.mulf %5, %8 : vector<128x32xf32>
    %cst = arith.constant dense<0.000000e+00> : vector<128xf32>
    %10 = vector.multi_reduction <add>, %9, %cst [1] : vector<128x32xf32> to vector<128xf32>
    %11 = vector.shape_cast %10 : vector<128xf32> to vector<128x1xf32>
    %12 = arith.addf %7, %11 : vector<128x1xf32>
    %c0_8 = arith.constant 0 : index
    %c0_9 = arith.constant 0 : index
    %13 = vector.load %arg6[%c0_8, %c0_9] : memref<128x1xf32, #tpu.memory_space<vmem>>, vector<128x1xf32>
    tpu.vector_store %arg6[%c0_8, %c0_9], %12 {strides = array<i32>} : memref<128x1xf32, #tpu.memory_space<vmem>>, vector<128x1xf32>,
    %c0_i32_10 = arith.constant 0 : i32
    %14 = arith.cmpi eq, %arg1, %c0_i32_10 : i32
    %15 = arith.extui %14 : i1 to i32
    %c0_i32_11 = arith.constant 0 : i32
    %16 = arith.cmpi ne, %15, %c0_i32_11 : i32
    scf.if %16 {
      %c0_12 = arith.constant 0 : index
      %c0_13 = arith.constant 0 : index
      %17 = vector.load %arg6[%c0_12, %c0_13] : memref<128x1xf32, #tpu.memory_space<vmem>>, vector<128x1xf32>
      %cst_14 = arith.constant 5.000000e-01 : f32
      %18 = vector.broadcast %cst_14 : f32 to vector<128x1xf32>
      %19 = arith.mulf %17, %18 : vector<128x1xf32>
      %20 = math.tanh %19 : vector<128x1xf32>
      %c0_15 = arith.constant 0 : index
      %c0_16 = arith.constant 0 : index
      %21 = vector.load %arg5[%c0_15, %c0_16] : memref<128x1xf32, #tpu.memory_space<vmem>>, vector<128x1xf32>
      tpu.vector_store %arg5[%c0_15, %c0_16], %20 {strides = array<i32>} : memref<128x1xf32, #tpu.memory_space<vmem>>, vector<128x1xf32>,
    } else {
    }
    return
  }
  func.func @transform_0(%arg0: i32, %arg1: i32) -> (i32, i32) {
    %c0_i32 = arith.constant 0 : i32
    return %arg0, %arg1 : i32, i32
  }
  func.func @transform_1(%arg0: i32, %arg1: i32) -> (i32, i32) {
    %c0_i32 = arith.constant 0 : i32
    return %arg0, %arg1 : i32, i32
  }
  func.func @transform_2(%arg0: i32, %arg1: i32) -> (i32, i32) {
    %c0_i32 = arith.constant 0 : i32
    %c0_i32_0 = arith.constant 0 : i32
    return %c0_i32, %arg1 : i32, i32
  }
  func.func @transform_3(%arg0: i32, %arg1: i32) -> (i32, i32) {
    %c0_i32 = arith.constant 0 : i32
    %c0_i32_0 = arith.constant 0 : i32
    return %arg0, %c0_i32 : i32, i32
  }
}

</mosaic_0001>

<bundles_post_ra>
// kernel: tpu_custom_call.1
= control target key start
LH: loop header
LB: loop body
LE: loop exit
PB: predicated region body
PF: predicated region fallthrough
CT: control target
= control target key end

     0   :  { %vm18_vm0 = vcmask 7168   ;;  %v309_v3 = vmov 0.0   ;;  %vm122_vm1 = vcmask 261120   ;;  %s559_s0 = inlined_call_operand.vmem [shape: f32[128,32], index: 0, kind: input, shape index: {}]   ;;  %s560_s1 = inlined_call_operand.vmem [shape: f32[128,32], index: 1, kind: input, shape index: {}]   ;;  %s561_s2 = inlined_call_operand.vmem [shape: f32[1,32], index: 2, kind: input, shape index: {}]   ;;  %s562_s3 = inlined_call_operand.vmem [shape: f32[128,1], index: 3, kind: output, shape index: {}]  }
   0x1   :  { %v37_v0 = vld [vmem:[%s559_s0 + $0x10] sm:$0xff]  ;;  %v339_v2 = vld [vmem:[%s561_s2] ss:$0 sm:$0xff]  ;;  %21 = vst.msk [vmem:[#allocation2 + $0x10] sm:$0xff] %vm18_vm0, %v309_v3  ;;  %19 = vst.msk [vmem:[#allocation2] sm:$0xff] %vm18_vm0, %v309_v3 }
   0x2   :  { %v53_v1 = vld [vmem:[%s560_s1 + $0x10] sm:$0xff]  ;;  %20 = vst.msk [vmem:[#allocation2 + $0x8] sm:$0xff] %vm18_vm0, %v309_v3  ;;  %22 = vst.msk [vmem:[#allocation2 + $0x18] sm:$0xff] %vm18_vm0, %v309_v3  ;;  %v35_v5 = vld [vmem:[%s559_s0] sm:$0xff] }
   0x3   :  { %23 = vst.msk [vmem:[#allocation2 + $0x20] sm:$0xff] %vm18_vm0, %v309_v3  ;;  %24 = vst.msk [vmem:[#allocation2 + $0x28] sm:$0xff] %vm18_vm0, %v309_v3  ;;  %v69_v4 = vsub.f32 %v37_v0, %v53_v1  ;;  %v51_v6 = vld [vmem:[%s560_s1] sm:$0xff]  ;;  %v38_v7 = vld [vmem:[%s559_s0 + $0x18] sm:$0xff] }
   0x4   :  { %25 = vst.msk [vmem:[#allocation2 + $0x30] sm:$0xff] %vm18_vm0, %v309_v3  ;;  %26 = vst.msk [vmem:[#allocation2 + $0x38] sm:$0xff] %vm18_vm0, %v309_v3  ;;  %v67_v8 = vsub.f32 %v35_v5, %v51_v6  ;;  %v54_v9 = vld [vmem:[%s560_s1 + $0x18] sm:$0xff]  ;;  %v36_v10 = vld [vmem:[%s559_s0 + $0x8] sm:$0xff] }
   0x5   :  { %27 = vst.msk [vmem:[#allocation2 + $0x40] sm:$0xff] %vm18_vm0, %v309_v3  ;;  %28 = vst.msk [vmem:[#allocation2 + $0x48] sm:$0xff] %vm18_vm0, %v309_v3  ;;  %v52_v11 = vld [vmem:[%s560_s1 + $0x8] sm:$0xff]  ;;  %v108_v12 = vmul.f32 %v339_v2, %v69_v4  ;;  %v70_v13 = vsub.f32 %v38_v7, %v54_v9  ;;  %v39_v17 = vld [vmem:[%s559_s0 + $0x20] sm:$0xff] }
   0x6   :  { %29 = vst.msk [vmem:[#allocation2 + $0x50] sm:$0xff] %vm18_vm0, %v309_v3  ;;  %30 = vst.msk [vmem:[#allocation2 + $0x58] sm:$0xff] %vm18_vm0, %v309_v3  ;;  %v68_v14 = vsub.f32 %v36_v10, %v52_v11  ;;  %v40_v15 = vld [vmem:[%s559_s0 + $0x28] sm:$0xff]  ;;  %v106_v18 = vmul.f32 %v339_v2, %v67_v8  ;;  %v55_v20 = vld [vmem:[%s560_s1 + $0x20] sm:$0xff] }
   0x7   :  { %31 = vst.msk [vmem:[#allocation2 + $0x60] sm:$0xff] %vm18_vm0, %v309_v3  ;;  %32 = vst.msk [vmem:[#allocation2 + $0x68] sm:$0xff] %vm18_vm0, %v309_v3  ;;  %v56_v16 = vld [vmem:[%s560_s1 + $0x28] sm:$0xff]  ;;  %v42_v21 = vld [vmem:[%s559_s0 + $0x38] sm:$0xff]  ;;  %v129_v23 = vsel %vm122_vm1, %v108_v12, 0.0  ;;  %v109_v24 = vmul.f32 %v339_v2, %v70_v13  ;;  %v71_v26 = vsub.f32 %v39_v17, %v55_v20 }
   0x8   :  { %33 = vst.msk [vmem:[#allocation2 + $0x70] sm:$0xff] %vm18_vm0, %v309_v3  ;;  %34 = vst.msk [vmem:[#allocation2 + $0x78] sm:$0xff] %vm18_vm0, %v309_v3  ;;  %v72_v19 = vsub.f32 %v40_v15, %v56_v16  ;;  %v58_v22 = vld [vmem:[%s560_s1 + $0x38] sm:$0xff]  ;;  %v107_v25 = vmul.f32 %v339_v2, %v68_v14  ;;  %v41_v27 = vld [vmem:[%s559_s0 + $0x30] sm:$0xff]  ;;  %130 = vadd.xlane.f32.xlu1 %v129_v23  ;;  %v123_v29 = vsel %vm122_vm1, %v106_v18, 0.0 }
   0x9   :  { %v57_v28 = vld [vmem:[%s560_s1 + $0x30] sm:$0xff]  ;;  %124 = vadd.xlane.f32.xlu0 %v123_v29  ;;  %v132_v30 = vsel %vm122_vm1, %v109_v24, 0.0  ;;  %v74_v32 = vsub.f32 %v42_v21, %v58_v22  ;;  %v110_v34 = vmul.f32 %v339_v2, %v71_v26  ;;  %v44_v36 = vld [vmem:[%s559_s0 + $0x48] sm:$0xff]  ;;  %v43_v38 = vld [vmem:[%s559_s0 + $0x40] sm:$0xff] }
   0xa   :  { %v111_v31 = vmul.f32 %v339_v2, %v72_v19  ;;  %v126_v33 = vsel %vm122_vm1, %v107_v25, 0.0  ;;  %v73_v35 = vsub.f32 %v41_v27, %v57_v28  ;;  %v60_v37 = vld [vmem:[%s560_s1 + $0x48] sm:$0xff]  ;;  %v59_v39 = vld [vmem:[%s560_s1 + $0x40] sm:$0xff]  ;;  %v46_v46 = vld [vmem:[%s559_s0 + $0x58] sm:$0xff] }
   0xb   :  { %v113_v41 = vmul.f32 %v339_v2, %v74_v32  ;;  %v76_v42 = vsub.f32 %v44_v36, %v60_v37  ;;  %v135_v43 = vsel %vm122_vm1, %v110_v34, 0.0  ;;  %v75_v45 = vsub.f32 %v43_v38, %v59_v39  ;;  %v62_v47 = vld [vmem:[%s560_s1 + $0x58] sm:$0xff]  ;;  %v45_v48 = vld [vmem:[%s559_s0 + $0x50] sm:$0xff]  ;;  %v48_v56 = vld [vmem:[%s559_s0 + $0x68] sm:$0xff] }
   0xc   :  { %133 = vadd.xlane.f32.xlu1 %v132_v30  ;;  %v138_v40 = vsel %vm122_vm1, %v111_v31, 0.0  ;;  %v112_v44 = vmul.f32 %v339_v2, %v73_v35  ;;  %v61_v49 = vld [vmem:[%s560_s1 + $0x50] sm:$0xff]  ;;  %v78_v52 = vsub.f32 %v46_v46, %v62_v47  ;;  %v64_v57 = vld [vmem:[%s560_s1 + $0x68] sm:$0xff]  ;;  %v47_v58 = vld [vmem:[%s559_s0 + $0x60] sm:$0xff] }
   0xd   :  { %127 = vadd.xlane.f32.xlu0 %v126_v33  ;;  %v144_v50 = vsel %vm122_vm1, %v113_v41, 0.0  ;;  %v115_v51 = vmul.f32 %v339_v2, %v76_v42  ;;  %v114_v54 = vmul.f32 %v339_v2, %v75_v45  ;;  %v77_v55 = vsub.f32 %v45_v48, %v61_v49  ;;  %v63_v59 = vld [vmem:[%s560_s1 + $0x60] sm:$0xff]  ;;  %v50_v3 = vld [vmem:[%s559_s0 + $0x78] sm:$0xff]  ;;  %v49_v5 = vld [vmem:[%s559_s0 + $0x70] sm:$0xff] }
   0xe   :  { %v141_v53 = vsel %vm122_vm1, %v112_v44, 0.0  ;;  %v117_v61 = vmul.f32 %v339_v2, %v78_v52  ;;  %v80_v62 = vsub.f32 %v48_v56, %v64_v57  ;;  %v79_v1 = vsub.f32 %v47_v58, %v63_v59  ;;  %v66_v4 = vld [vmem:[%s560_s1 + $0x78] sm:$0xff]  ;;  %v65_v6 = vld [vmem:[%s560_s1 + $0x70] sm:$0xff]  ;;  %v84_v20 = vld [vmem:[#allocation2] sm:$0xff] }
   0xf   :  { %v150_v60 = vsel %vm122_vm1, %v115_v51, 0.0  ;;  %v147_v63 = vsel %vm122_vm1, %v114_v54, 0.0  ;;  %v116_v0 = vmul.f32 %v339_v2, %v77_v55  ;;  %v82_v9 = vsub.f32 %v50_v3, %v66_v4  ;;  %v86_v19 = vld [vmem:[#allocation2 + $0x10] sm:$0xff]  ;;  %v87_v25 = vld [vmem:[#allocation2 + $0x18] sm:$0xff]  ;;  %v85_v26 = vld [vmem:[#allocation2 + $0x8] sm:$0xff] }
  0x10   :  { %139 = vadd.xlane.f32.xlu1 %v138_v40  ;;  %v156_v7 = vsel %vm122_vm1, %v117_v61, 0.0  ;;  %v119_v8 = vmul.f32 %v339_v2, %v80_v62  ;;  %v118_v11 = vmul.f32 %v339_v2, %v79_v1  ;;  %v81_v12 = vsub.f32 %v49_v5, %v65_v6  ;;  %v89_v30 = vld [vmem:[#allocation2 + $0x28] sm:$0xff]  ;;  %v88_v31 = vld [vmem:[#allocation2 + $0x20] sm:$0xff]  ;;  %v91_v37 = vld [vmem:[#allocation2 + $0x38] sm:$0xff] }
  0x11   :  { %136 = vadd.xlane.f32.xlu0 %v135_v43  ;;  %v153_v10 = vsel %vm122_vm1, %v116_v0, 0.0  ;;  %v121_v14 = vmul.f32 %v339_v2, %v82_v9  ;;  %v90_v40 = vld [vmem:[#allocation2 + $0x30] sm:$0xff]  ;;  %v93_v47 = vld [vmem:[#allocation2 + $0x48] sm:$0xff]  ;;  %v95_v57 = vld [vmem:[#allocation2 + $0x58] sm:$0xff] }
  0x12   :  { %v162_v13 = vsel %vm122_vm1, %v119_v8, 0.0  ;;  %v159_v15 = vsel %vm122_vm1, %v118_v11, 0.0  ;;  %v120_v16 = vmul.f32 %v339_v2, %v81_v12  ;;  %v97_v4 = vld [vmem:[#allocation2 + $0x68] sm:$0xff]  ;;  %v96_v8 = vld [vmem:[#allocation2 + $0x60] sm:$0xff] }
  0x13   :  { %v168_v17 = vsel %vm122_vm1, %v121_v14, 0.0 }
  0x14   :  { %145 = vadd.xlane.f32.xlu1 %v144_v50  ;;  %v165_v18 = vsel %vm122_vm1, %v120_v16, 0.0  ;;  %v92_v50 = vld [vmem:[#allocation2 + $0x40] sm:$0xff]  ;;  %v99_v16 = vld [vmem:[#allocation2 + $0x78] sm:$0xff] }
  0x15   :  { %142 = vadd.xlane.f32.xlu0 %v141_v53 }
  0x18   :  { %151 = vadd.xlane.f32.xlu1 %v150_v60  ;;  %v94_v60 = vld [vmem:[#allocation2 + $0x50] sm:$0xff] }
  0x19   :  { %148 = vadd.xlane.f32.xlu0 %v147_v63 }
  0x1c   :  { %157 = vadd.xlane.f32.xlu1 %v156_v7 }
  0x1d   :  { %154 = vadd.xlane.f32.xlu0 %v153_v10 }
  0x20   :  { %163 = vadd.xlane.f32.xlu1 %v162_v13 }
  0x21   :  { %160 = vadd.xlane.f32.xlu0 %v159_v15 }
  0x24   :  { %169 = vadd.xlane.f32.xlu1 %v168_v17 }
  0x25   :  { %166 = vadd.xlane.f32.xlu0 %v165_v18 }
  0x95   :  { %v131_v21 = vpop.xlane.xlu1 %130 }
  0x96   :  { %v173_v22 = vadd.f32 %v131_v21, %v86_v19  ;;  %v125_v23 = vpop.xlane.xlu0 %124 }
  0x97   :  { %v171_v24 = vadd.f32 %v125_v23, %v84_v20  ;;  %v98_v20 = vld [vmem:[#allocation2 + $0x70] sm:$0xff] }
  0x98   :  { %190 = vst.msk [vmem:[#allocation2 + $0x10] sm:$0xff] %vm18_vm0, %v173_v22 }
  0x99   :  { %188 = vst.msk [vmem:[#allocation2] sm:$0xff] %vm18_vm0, %v171_v24  ;;  %v134_v2 = vpop.xlane.xlu1 %133 }
  0x9a   :  { %v174_v27 = vadd.f32 %v134_v2, %v87_v25  ;;  %v128_v28 = vpop.xlane.xlu0 %127 }
  0x9b   :  { %v172_v29 = vadd.f32 %v128_v28, %v85_v26 }
  0x9c   :  { %191 = vst.msk [vmem:[#allocation2 + $0x18] sm:$0xff] %vm18_vm0, %v174_v27 }
  0x9d   :  { %189 = vst.msk [vmem:[#allocation2 + $0x8] sm:$0xff] %vm18_vm0, %v172_v29  ;;  %v140_v32 = vpop.xlane.xlu1 %139 }
  0x9e   :  { %v176_v33 = vadd.f32 %v140_v32, %v89_v30  ;;  %v137_v34 = vpop.xlane.xlu0 %136 }
  0x9f   :  { %v209_v35 = vld [vmem:[#allocation2 + $0x10] sm:$0xff]  ;;  %v175_v36 = vadd.f32 %v137_v34, %v88_v31 }
  0xa0   :  { %v225_v38 = vmul.f32 0.5, %v209_v35  ;;  %v207_v39 = vld [vmem:[#allocation2] sm:$0xff]  ;;  %193 = vst.msk [vmem:[#allocation2 + $0x28] sm:$0xff] %vm18_vm0, %v176_v33 }
  0xa1   :  { %v223_v41 = vmul.f32 0.5, %v207_v39  ;;  %192 = vst.msk [vmem:[#allocation2 + $0x20] sm:$0xff] %vm18_vm0, %v175_v36  ;;  %v146_v42 = vpop.xlane.xlu1 %145 }
  0xa2   :  { %277 = vtanh.f32 %v225_v38  ;;  %v178_v43 = vadd.f32 %v146_v42, %v91_v37  ;;  %v143_v44 = vpop.xlane.xlu0 %142 }
  0xa3   :  { %279 = vtanh.f32 %v223_v41  ;;  %v210_v45 = vld [vmem:[#allocation2 + $0x18] sm:$0xff]  ;;  %v177_v46 = vadd.f32 %v143_v44, %v90_v40 }
  0xa4   :  { %v226_v48 = vmul.f32 0.5, %v210_v45  ;;  %v208_v49 = vld [vmem:[#allocation2 + $0x8] sm:$0xff]  ;;  %195 = vst.msk [vmem:[#allocation2 + $0x38] sm:$0xff] %vm18_vm0, %v178_v43 }
  0xa5   :  { %v224_v51 = vmul.f32 0.5, %v208_v49  ;;  %194 = vst.msk [vmem:[#allocation2 + $0x30] sm:$0xff] %vm18_vm0, %v177_v46  ;;  %v152_v52 = vpop.xlane.xlu1 %151 }
  0xa6   :  { %281 = vtanh.f32 %v226_v48  ;;  %v180_v53 = vadd.f32 %v152_v52, %v93_v47  ;;  %v149_v54 = vpop.xlane.xlu0 %148 }
  0xa7   :  { %283 = vtanh.f32 %v224_v51  ;;  %v212_v55 = vld [vmem:[#allocation2 + $0x28] sm:$0xff]  ;;  %v179_v56 = vadd.f32 %v149_v54, %v92_v50 }
  0xa8   :  { %v228_v58 = vmul.f32 0.5, %v212_v55  ;;  %v211_v59 = vld [vmem:[#allocation2 + $0x20] sm:$0xff]  ;;  %197 = vst.msk [vmem:[#allocation2 + $0x48] sm:$0xff] %vm18_vm0, %v180_v53 }
  0xa9   :  { %v227_v61 = vmul.f32 0.5, %v211_v59  ;;  %196 = vst.msk [vmem:[#allocation2 + $0x40] sm:$0xff] %vm18_vm0, %v179_v56  ;;  %v158_v62 = vpop.xlane.xlu1 %157 }
  0xaa   :  { %285 = vtanh.f32 %v228_v58  ;;  %v182_v63 = vadd.f32 %v158_v62, %v95_v57  ;;  %v155_v0 = vpop.xlane.xlu0 %154 }
  0xab   :  { %287 = vtanh.f32 %v227_v61  ;;  %v214_v1 = vld [vmem:[#allocation2 + $0x38] sm:$0xff]  ;;  %v181_v3 = vadd.f32 %v155_v0, %v94_v60 }
  0xac   :  { %v278_v5 = vpop.eup %277  ;;  %v230_v6 = vmul.f32 0.5, %v214_v1  ;;  %v213_v7 = vld [vmem:[#allocation2 + $0x30] sm:$0xff]  ;;  %199 = vst.msk [vmem:[#allocation2 + $0x58] sm:$0xff] %vm18_vm0, %v182_v63 }
  0xad   :  { %v280_v9 = vpop.eup %279  ;;  %257 = vst.msk [vmem:[%s562_s3 + $0x10] sm:$0xff] %vm18_vm0, %v278_v5  ;;  %v229_v10 = vmul.f32 0.5, %v213_v7  ;;  %198 = vst.msk [vmem:[#allocation2 + $0x50] sm:$0xff] %vm18_vm0, %v181_v3  ;;  %v164_v11 = vpop.xlane.xlu1 %163 }
  0xae   :  { %255 = vst.msk [vmem:[%s562_s3] sm:$0xff] %vm18_vm0, %v280_v9  ;;  %289 = vtanh.f32 %v230_v6  ;;  %v184_v12 = vadd.f32 %v164_v11, %v97_v4  ;;  %v161_v13 = vpop.xlane.xlu0 %160 }
  0xaf   :  { %291 = vtanh.f32 %v229_v10  ;;  %v216_v14 = vld [vmem:[#allocation2 + $0x48] sm:$0xff]  ;;  %v183_v15 = vadd.f32 %v161_v13, %v96_v8 }
  0xb0   :  { %v282_v17 = vpop.eup %281  ;;  %v232_v18 = vmul.f32 0.5, %v216_v14  ;;  %v215_v19 = vld [vmem:[#allocation2 + $0x40] sm:$0xff]  ;;  %201 = vst.msk [vmem:[#allocation2 + $0x68] sm:$0xff] %vm18_vm0, %v184_v12 }
  0xb1   :  { %v284_v21 = vpop.eup %283  ;;  %258 = vst.msk [vmem:[%s562_s3 + $0x18] sm:$0xff] %vm18_vm0, %v282_v17  ;;  %v231_v22 = vmul.f32 0.5, %v215_v19  ;;  %200 = vst.msk [vmem:[#allocation2 + $0x60] sm:$0xff] %vm18_vm0, %v183_v15  ;;  %v170_v23 = vpop.xlane.xlu1 %169 }
  0xb2   :  { %256 = vst.msk [vmem:[%s562_s3 + $0x8] sm:$0xff] %vm18_vm0, %v284_v21  ;;  %293 = vtanh.f32 %v232_v18  ;;  %v186_v24 = vadd.f32 %v170_v23, %v99_v16  ;;  %v167_v25 = vpop.xlane.xlu0 %166 }
  0xb3   :  { %295 = vtanh.f32 %v231_v22  ;;  %v218_v26 = vld [vmem:[#allocation2 + $0x58] sm:$0xff]  ;;  %v185_v2 = vadd.f32 %v167_v25, %v98_v20 }
  0xb4   :  { %v286_v27 = vpop.eup %285  ;;  %v234_v28 = vmul.f32 0.5, %v218_v26  ;;  %v217_v29 = vld [vmem:[#allocation2 + $0x50] sm:$0xff]  ;;  %203 = vst.msk [vmem:[#allocation2 + $0x78] sm:$0xff] %vm18_vm0, %v186_v24 }
  0xb5   :  { %v288_v30 = vpop.eup %287  ;;  %260 = vst.msk [vmem:[%s562_s3 + $0x28] sm:$0xff] %vm18_vm0, %v286_v27  ;;  %v233_v31 = vmul.f32 0.5, %v217_v29  ;;  %202 = vst.msk [vmem:[#allocation2 + $0x70] sm:$0xff] %vm18_vm0, %v185_v2 }
  0xb6   :  { %259 = vst.msk [vmem:[%s562_s3 + $0x20] sm:$0xff] %vm18_vm0, %v288_v30  ;;  %297 = vtanh.f32 %v234_v28 }
  0xb7   :  { %299 = vtanh.f32 %v233_v31  ;;  %v220_v32 = vld [vmem:[#allocation2 + $0x68] sm:$0xff] }
  0xb8   :  { %v290_v33 = vpop.eup %289  ;;  %v236_v34 = vmul.f32 0.5, %v220_v32  ;;  %v219_v35 = vld [vmem:[#allocation2 + $0x60] sm:$0xff] }
  0xb9   :  { %v292_v36 = vpop.eup %291  ;;  %262 = vst.msk [vmem:[%s562_s3 + $0x38] sm:$0xff] %vm18_vm0, %v290_v33  ;;  %v235_v37 = vmul.f32 0.5, %v219_v35 }
  0xba   :  { %261 = vst.msk [vmem:[%s562_s3 + $0x30] sm:$0xff] %vm18_vm0, %v292_v36  ;;  %301 = vtanh.f32 %v236_v34 }
  0xbb   :  { %303 = vtanh.f32 %v235_v37  ;;  %v222_v38 = vld [vmem:[#allocation2 + $0x78] sm:$0xff] }
  0xbc   :  { %v294_v39 = vpop.eup %293  ;;  %v238_v40 = vmul.f32 0.5, %v222_v38  ;;  %v221_v41 = vld [vmem:[#allocation2 + $0x70] sm:$0xff] }
  0xbd   :  { %v296_v42 = vpop.eup %295  ;;  %264 = vst.msk [vmem:[%s562_s3 + $0x48] sm:$0xff] %vm18_vm0, %v294_v39  ;;  %v237_v43 = vmul.f32 0.5, %v221_v41 }
  0xbe   :  { %263 = vst.msk [vmem:[%s562_s3 + $0x40] sm:$0xff] %vm18_vm0, %v296_v42  ;;  %305 = vtanh.f32 %v238_v40 }
  0xbf   :  { %307 = vtanh.f32 %v237_v43 }
  0xc0   :  { %v298_v44 = vpop.eup %297 }
  0xc1   :  { %v300_v45 = vpop.eup %299  ;;  %266 = vst.msk [vmem:[%s562_s3 + $0x58] sm:$0xff] %vm18_vm0, %v298_v44 }
  0xc2   :  { %265 = vst.msk [vmem:[%s562_s3 + $0x50] sm:$0xff] %vm18_vm0, %v300_v45 }
  0xc4   :  { %v302_v46 = vpop.eup %301 }
  0xc5   :  { %v304_v47 = vpop.eup %303  ;;  %268 = vst.msk [vmem:[%s562_s3 + $0x68] sm:$0xff] %vm18_vm0, %v302_v46 }
  0xc6   :  { %267 = vst.msk [vmem:[%s562_s3 + $0x60] sm:$0xff] %vm18_vm0, %v304_v47 }
  0xc8   :  { %v306_v48 = vpop.eup %305 }
  0xc9   :  { %v308_v49 = vpop.eup %307  ;;  %270 = vst.msk [vmem:[%s562_s3 + $0x78] sm:$0xff] %vm18_vm0, %v306_v48 }
  0xca   :  { %269 = vst.msk [vmem:[%s562_s3 + $0x70] sm:$0xff] %vm18_vm0, %v308_v49 }

</bundles_post_ra>
